<compile_context>
chip_gen: v7x
topology: tpu7x:2x2x1
jax: 0.10.0
libtpu: 0.0.40
codegen_flags: <defaults>
</compile_context>

<pallas_src>
import jax
import jax.numpy as jnp
from jax.experimental import pallas as pl
from jax.experimental.pallas import tpu as pltpu

INPUT_SIZE = 28          # matches `input_size = 28` in ai.py
DICE_SIZE = 2            # torch.cat((state, dice_roll), dim=1)
FC1_DIMS = 64
FC2_DIMS = 64
N_ACTIONS = 24           # matches `n_actions = 24` in ai.py
N_OUT_PAD = 32           # padded fc3 width (full-dim block => legal, 4x less writeback)
CONCAT_DIM = INPUT_SIZE + DICE_SIZE


def _round_up(x, m):
    return (x + m - 1) // m * m


def dqn_kernel(s_ref, d_ref, w1s_ref, w1d_ref, b1_ref,
               w2_ref, b2_ref, w3_ref, b3_ref, out_ref):
    """Fused MLP over one batch tile; concat folded, dice handled on the VPU."""
    # fc1: [state, dice] @ W1 + b1 == state @ W1_state (MXU)
    #                                + dice broadcast-FMAs (VPU, K=2 not worth MXU)
    h1 = jnp.dot(s_ref[...], w1s_ref[...], preferred_element_type=jnp.float32)
    d = d_ref[...]
    h1 = h1 + d[:, 0:1] * w1d_ref[0:1, :] + d[:, 1:2] * w1d_ref[1:2, :]
    h1 = jnp.maximum(h1 + b1_ref[...], 0.0)                    # F.relu(fc1(x))

    h2 = jnp.dot(h1, w2_ref[...], preferred_element_type=jnp.float32)
    h2 = jnp.maximum(h2 + b2_ref[...], 0.0)                    # F.relu(fc2(x))

    # fc3 into a 32-lane padded slab (columns 24:32 are zero weights/bias).
    out_ref[...] = (
        jnp.dot(h2, w3_ref[...], preferred_element_type=jnp.float32)
        + b3_ref[...]
    )


def _choose_tiling(B, block_b):
    """Balanced batch tiling: tb multiple of 8, tiles divide b_pad evenly,
    and >= 2 tiles whenever B > 16 so the parallel axis can use both v7x TCs."""
    min_tiles = 2 if B > 16 else 1
    n_tiles = max(min_tiles, pl.cdiv(B, block_b))
    tb = _round_up(pl.cdiv(B, n_tiles), 8)
    b_pad = tb * n_tiles
    return tb, b_pad, n_tiles


def dqn_forward(state, dice_roll, kernel_params, *, block_b=2048):
    """Pallas equivalent of DQN.forward(state, dice_roll).

    Note: for tiny online-inference batches (B ~ 1-32) the parameter DMAs and
    call setup dominate; this kernel is aimed at the replay-buffer batch path.
    """
    # TODO(synk): on v6e/v7x, streaming activations in bf16 halves HBM bytes;
    # kept in f32 here to preserve the tight 1e-5 reference tolerance.
    state = state.astype(jnp.float32)
    dice_roll = dice_roll.astype(jnp.float32)
    w1s, w1d, b1, w2, b2, w3p, b3p = kernel_params

    B = state.shape[0]
    tb, b_pad, n_tiles = _choose_tiling(B, block_b)
    if b_pad != B:
        state = jnp.pad(state, ((0, b_pad - B), (0, 0)))
        dice_roll = jnp.pad(dice_roll, ((0, b_pad - B), (0, 0)))

    grid = (n_tiles,)

    def batch_spec(feat):
        # Streamed over the batch grid axis.
        return pl.BlockSpec((tb, feat), lambda i: (i, 0))

    def resident_spec(shape):
        # Constant index map -> weights stay VMEM-resident across grid steps.
        return pl.BlockSpec(shape, lambda i: (0, 0))

    param_bytes = 4 * (w1s.size + w1d.size + b1.size + w2.size + b2.size
                       + w3p.size + b3p.size)
    cost = pl.CostEstimate(
        flops=2 * b_pad * (INPUT_SIZE * FC1_DIMS
                           + FC1_DIMS * FC2_DIMS
                           + FC2_DIMS * N_OUT_PAD),
        transcendentals=0,
        bytes_accessed=4 * b_pad * (INPUT_SIZE + DICE_SIZE + N_OUT_PAD)
                       + param_bytes,
    )

    out_padded = pl.pallas_call(
        dqn_kernel,
        out_shape=jax.ShapeDtypeStruct((b_pad, N_OUT_PAD), jnp.float32),
        grid=grid,
        in_specs=[
            batch_spec(INPUT_SIZE),
            batch_spec(DICE_SIZE),
            resident_spec(w1s.shape), resident_spec(w1d.shape),
            resident_spec(b1.shape),
            resident_spec(w2.shape), resident_spec(b2.shape),
            resident_spec(w3p.shape), resident_spec(b3p.shape),
        ],
        out_specs=batch_spec(N_OUT_PAD),
        compiler_params=pltpu.CompilerParams(
            dimension_semantics=("parallel",)),   # batch tiles -> both TCs on v7x
        cost_estimate=cost,
    )(state, dice_roll, w1s, w1d, b1, w2, b2, w3p, b3p)

    # Drop batch padding and the lane padding of the output features.
    return out_padded[:B, :N_ACTIONS]


def init_params(key):
    """Deterministic PyTorch-style Linear init: U(-1/sqrt(fan_in), 1/sqrt(fan_in)).

    Returns the *logical* (unpadded) parameters, stored transposed (in, out).
    """
    def linear(key, fan_in, fan_out):
        kw, kb = jax.random.split(key)
        bound = 1.0 / jnp.sqrt(float(fan_in))
        w = jax.random.uniform(kw, (fan_in, fan_out), jnp.float32, -bound, bound)
        b = jax.random.uniform(kb, (1, fan_out), jnp.float32, -bound, bound)
        return w, b

    k1, k2, k3 = jax.random.split(key, 3)
    w1, b1 = linear(k1, CONCAT_DIM, FC1_DIMS)
    w2, b2 = linear(k2, FC1_DIMS, FC2_DIMS)
    w3, b3 = linear(k3, FC2_DIMS, N_ACTIONS)
    return (w1, b1, w2, b2, w3, b3)


def prepare_params(params):
    """One-time prep: split W1 for the folded concat, pad fc3 to 32 lanes."""
    w1, b1, w2, b2, w3, b3 = params
    w1s = w1[:INPUT_SIZE, :]            # (28, 64) — multiplies `state` (MXU)
    w1d = w1[INPUT_SIZE:, :]            # (2, 64)  — multiplies `dice_roll` (VPU)
    w3p = jnp.pad(w3, ((0, 0), (0, N_OUT_PAD - N_ACTIONS)))   # (64, 32)
    b3p = jnp.pad(b3, ((0, 0), (0, N_OUT_PAD - N_ACTIONS)))   # (1, 32)
    return (w1s, w1d, b1, w2, b2, w3p, b3p)


if __name__ == "__main__":
    key = jax.random.PRNGKey(0)
    k_params, k_state, k_dice = jax.random.split(key, 3)

    params = init_params(k_params)
    kernel_params = prepare_params(params)

    # Reference check in plain JAX (same math as the PyTorch forward).
    def ref_forward(state, dice_roll):
        x = jnp.concatenate([state, dice_roll], axis=1)
        w1, b1, w2, b2, w3, b3 = params
        h = jnp.maximum(x @ w1 + b1, 0.0)
        h = jnp.maximum(h @ w2 + b2, 0.0)
        return h @ w3 + b3

    # Small demo batch plus a non-multiple-of-tile batch to exercise tiling.
    for B in (4, 72):
        ks, kd = jax.random.split(jax.random.fold_in(key, B))
        state = jax.random.normal(ks, (B, INPUT_SIZE), jnp.float32)
        dice_roll = jax.random.normal(kd, (B, DICE_SIZE), jnp.float32)

        out = dqn_forward(state, dice_roll, kernel_params)
        out = jax.block_until_ready(out)

        ref = ref_forward(state, dice_roll)
        assert out.shape == (B, N_ACTIONS)
        assert jnp.allclose(out, ref, atol=1e-5, rtol=1e-5)

    # TODO(synk): optimizer (Adam), MSELoss and device handling from the
    # PyTorch module are training-side state, not part of the forward kernel.

    print("KERNEL_OK")
</pallas_src>

<mosaic_0001>
module attributes {stable_mosaic.version = 11 : i64} {
  func.func @dqn_kernel(%arg0: i32, %arg1: memref<8x28xf32, #tpu.memory_space<vmem>>, %arg2: memref<8x2xf32, #tpu.memory_space<vmem>>, %arg3: memref<28x64xf32, #tpu.memory_space<vmem>>, %arg4: memref<2x64xf32, #tpu.memory_space<vmem>>, %arg5: memref<1x64xf32, #tpu.memory_space<vmem>>, %arg6: memref<64x64xf32, #tpu.memory_space<vmem>>, %arg7: memref<1x64xf32, #tpu.memory_space<vmem>>, %arg8: memref<64x32xf32, #tpu.memory_space<vmem>>, %arg9: memref<1x32xf32, #tpu.memory_space<vmem>>, %arg10: memref<8x32xf32, #tpu.memory_space<vmem>>) attributes {dimension_semantics = [#tpu.dimension_semantics<parallel>], iteration_bounds = array<i64: 1>, scalar_prefetch = 0 : i64, scratch_operands = 0 : i64, tpu.core_type = #tpu.core_type<tc>, window_params = [{transform_indices = @transform_0, window_bounds = array<i64: 8, 28>}, {transform_indices = @transform_1, window_bounds = array<i64: 8, 2>}, {pipeline_mode = #tpu.pipeline_mode<synchronous>, transform_indices = @transform_2, window_bounds = array<i64: 28, 64>}, {pipeline_mode = #tpu.pipeline_mode<synchronous>, transform_indices = @transform_3, window_bounds = array<i64: 2, 64>}, {pipeline_mode = #tpu.pipeline_mode<synchronous>, transform_indices = @transform_4, window_bounds = array<i64: 1, 64>}, {pipeline_mode = #tpu.pipeline_mode<synchronous>, transform_indices = @transform_5, window_bounds = array<i64: 64, 64>}, {pipeline_mode = #tpu.pipeline_mode<synchronous>, transform_indices = @transform_6, window_bounds = array<i64: 1, 64>}, {pipeline_mode = #tpu.pipeline_mode<synchronous>, transform_indices = @transform_7, window_bounds = array<i64: 64, 32>}, {pipeline_mode = #tpu.pipeline_mode<synchronous>, transform_indices = @transform_8, window_bounds = array<i64: 1, 32>}, {transform_indices = @transform_9, window_bounds = array<i64: 8, 32>}]} {
    %c0 = arith.constant 0 : index
    %c0_0 = arith.constant 0 : index
    %0 = vector.load %arg1[%c0, %c0_0] : memref<8x28xf32, #tpu.memory_space<vmem>>, vector<8x28xf32>
    %c0_1 = arith.constant 0 : index
    %c0_2 = arith.constant 0 : index
    %1 = vector.load %arg3[%c0_1, %c0_2] : memref<28x64xf32, #tpu.memory_space<vmem>>, vector<28x64xf32>
    %cst = arith.constant dense<0.000000e+00> : vector<8x64xf32>
    %2 = tpu.matmul %0, %1, %cst {dimension_numbers = #tpu.dot_dimension_numbers<[1], [0], [0], [1], [0, 0, 1, 1], [], []>} : vector<8x28xf32>, vector<28x64xf32>, vector<8x64xf32> -> vector<8x64xf32>
    %c0_3 = arith.constant 0 : index
    %c0_4 = arith.constant 0 : index
    %3 = vector.load %arg2[%c0_3, %c0_4] : memref<8x2xf32, #tpu.memory_space<vmem>>, vector<8x2xf32>
    %4 = vector.extract_strided_slice %3 {offsets = [0, 0], sizes = [8, 1], strides = [1, 1]} : vector<8x2xf32> to vector<8x1xf32>
    %c0_5 = arith.constant 0 : index
    %c0_6 = arith.constant 0 : index
    %5 = vector.load %arg4[%c0_5, %c0_6] : memref<2x64xf32, #tpu.memory_space<vmem>>, vector<1x64xf32>
    %6 = vector.broadcast %4 : vector<8x1xf32> to vector<8x64xf32>
    %7 = vector.broadcast %5 : vector<1x64xf32> to vector<8x64xf32>
    %8 = arith.mulf %6, %7 : vector<8x64xf32>
    %9 = arith.addf %2, %8 : vector<8x64xf32>
    %10 = vector.extract_strided_slice %3 {offsets = [0, 1], sizes = [8, 1], strides = [1, 1]} : vector<8x2xf32> to vector<8x1xf32>
    %c1 = arith.constant 1 : index
    %c0_7 = arith.constant 0 : index
    %11 = vector.load %arg4[%c1, %c0_7] : memref<2x64xf32, #tpu.memory_space<vmem>>, vector<1x64xf32>
    %12 = vector.broadcast %10 : vector<8x1xf32> to vector<8x64xf32>
    %13 = vector.broadcast %11 : vector<1x64xf32> to vector<8x64xf32>
    %14 = arith.mulf %12, %13 : vector<8x64xf32>
    %15 = arith.addf %9, %14 : vector<8x64xf32>
    %c0_8 = arith.constant 0 : index
    %c0_9 = arith.constant 0 : index
    %16 = vector.load %arg5[%c0_8, %c0_9] : memref<1x64xf32, #tpu.memory_space<vmem>>, vector<1x64xf32>
    %17 = vector.broadcast %16 : vector<1x64xf32> to vector<8x64xf32>
    %18 = arith.addf %15, %17 : vector<8x64xf32>
    %cst_10 = arith.constant 0.000000e+00 : f32
    %19 = vector.broadcast %cst_10 : f32 to vector<8x64xf32>
    %20 = arith.maximumf %18, %19 : vector<8x64xf32>
    %c0_11 = arith.constant 0 : index
    %c0_12 = arith.constant 0 : index
    %21 = vector.load %arg6[%c0_11, %c0_12] : memref<64x64xf32, #tpu.memory_space<vmem>>, vector<64x64xf32>
    %cst_13 = arith.constant dense<0.000000e+00> : vector<8x64xf32>
    %22 = tpu.matmul %20, %21, %cst_13 {dimension_numbers = #tpu.dot_dimension_numbers<[1], [0], [0], [1], [0, 0, 1, 1], [], []>} : vector<8x64xf32>, vector<64x64xf32>, vector<8x64xf32> -> vector<8x64xf32>
    %c0_14 = arith.constant 0 : index
    %c0_15 = arith.constant 0 : index
    %23 = vector.load %arg7[%c0_14, %c0_15] : memref<1x64xf32, #tpu.memory_space<vmem>>, vector<1x64xf32>
    %24 = vector.broadcast %23 : vector<1x64xf32> to vector<8x64xf32>
    %25 = arith.addf %22, %24 : vector<8x64xf32>
    %cst_16 = arith.constant 0.000000e+00 : f32
    %26 = vector.broadcast %cst_16 : f32 to vector<8x64xf32>
    %27 = arith.maximumf %25, %26 : vector<8x64xf32>
    %c0_17 = arith.constant 0 : index
    %c0_18 = arith.constant 0 : index
    %28 = vector.load %arg8[%c0_17, %c0_18] : memref<64x32xf32, #tpu.memory_space<vmem>>, vector<64x32xf32>
    %cst_19 = arith.constant dense<0.000000e+00> : vector<8x32xf32>
    %29 = tpu.matmul %27, %28, %cst_19 {dimension_numbers = #tpu.dot_dimension_numbers<[1], [0], [0], [1], [0, 0, 1, 1], [], []>} : vector<8x64xf32>, vector<64x32xf32>, vector<8x32xf32> -> vector<8x32xf32>
    %c0_20 = arith.constant 0 : index
    %c0_21 = arith.constant 0 : index
    %30 = vector.load %arg9[%c0_20, %c0_21] : memref<1x32xf32, #tpu.memory_space<vmem>>, vector<1x32xf32>
    %31 = vector.broadcast %30 : vector<1x32xf32> to vector<8x32xf32>
    %32 = arith.addf %29, %31 : vector<8x32xf32>
    %c0_22 = arith.constant 0 : index
    %c0_23 = arith.constant 0 : index
    %33 = vector.load %arg10[%c0_22, %c0_23] : memref<8x32xf32, #tpu.memory_space<vmem>>, vector<8x32xf32>
    tpu.vector_store %arg10[%c0_22, %c0_23], %32 {strides = array<i32>} : memref<8x32xf32, #tpu.memory_space<vmem>>, vector<8x32xf32>,
    return
  }
  func.func @transform_0(%arg0: i32) -> (i32, i32) {
    %c0_i32 = arith.constant 0 : i32
    %c0_i32_0 = arith.constant 0 : i32
    return %arg0, %c0_i32 : i32, i32
  }
  func.func @transform_1(%arg0: i32) -> (i32, i32) {
    %c0_i32 = arith.constant 0 : i32
    %c0_i32_0 = arith.constant 0 : i32
    return %arg0, %c0_i32 : i32, i32
  }
  func.func @transform_2(%arg0: i32) -> (i32, i32) {
    %c0_i32 = arith.constant 0 : i32
    %c0_i32_0 = arith.constant 0 : i32
    %c0_i32_1 = arith.constant 0 : i32
    return %c0_i32, %c0_i32_0 : i32, i32
  }
  func.func @transform_3(%arg0: i32) -> (i32, i32) {
    %c0_i32 = arith.constant 0 : i32
    %c0_i32_0 = arith.constant 0 : i32
    %c0_i32_1 = arith.constant 0 : i32
    return %c0_i32, %c0_i32_0 : i32, i32
  }
  func.func @transform_4(%arg0: i32) -> (i32, i32) {
    %c0_i32 = arith.constant 0 : i32
    %c0_i32_0 = arith.constant 0 : i32
    %c0_i32_1 = arith.constant 0 : i32
    return %c0_i32, %c0_i32_0 : i32, i32
  }
  func.func @transform_5(%arg0: i32) -> (i32, i32) {
    %c0_i32 = arith.constant 0 : i32
    %c0_i32_0 = arith.constant 0 : i32
    %c0_i32_1 = arith.constant 0 : i32
    return %c0_i32, %c0_i32_0 : i32, i32
  }
  func.func @transform_6(%arg0: i32) -> (i32, i32) {
    %c0_i32 = arith.constant 0 : i32
    %c0_i32_0 = arith.constant 0 : i32
    %c0_i32_1 = arith.constant 0 : i32
    return %c0_i32, %c0_i32_0 : i32, i32
  }
  func.func @transform_7(%arg0: i32) -> (i32, i32) {
    %c0_i32 = arith.constant 0 : i32
    %c0_i32_0 = arith.constant 0 : i32
    %c0_i32_1 = arith.constant 0 : i32
    return %c0_i32, %c0_i32_0 : i32, i32
  }
  func.func @transform_8(%arg0: i32) -> (i32, i32) {
    %c0_i32 = arith.constant 0 : i32
    %c0_i32_0 = arith.constant 0 : i32
    %c0_i32_1 = arith.constant 0 : i32
    return %c0_i32, %c0_i32_0 : i32, i32
  }
  func.func @transform_9(%arg0: i32) -> (i32, i32) {
    %c0_i32 = arith.constant 0 : i32
    %c0_i32_0 = arith.constant 0 : i32
    return %arg0, %c0_i32 : i32, i32
  }
}

</mosaic_0001>

<bundles_post_ra>
// kernel: tpu_custom_call.1
= control target key start
LH: loop header
LB: loop body
LE: loop exit
PB: predicated region body
PF: predicated region fallthrough
CT: control target
= control target key end

     0   :  { %14 = vsyncpa [#allocation3], 0  ;;  %s698_s0 = inlined_call_operand.hbm [shape: f32[8,28], index: 0, kind: input, shape index: {}]   ;;  %s699_s1 = inlined_call_operand.vmem [shape: f32[8,2], index: 1, kind: input, shape index: {}]   ;;  %s700_s2 = inlined_call_operand.vmem [shape: f32[28,64], index: 2, kind: input, shape index: {}]   ;;  %s701_s3 = inlined_call_operand.vmem [shape: f32[2,64], index: 3, kind: input, shape index: {}]   ;;  %s702_s4 = inlined_call_operand.vmem [shape: f32[1,64], index: 4, kind: input, shape index: {}]   ;;  %s703_s5 = inlined_call_operand.vmem [shape: f32[64,64], index: 5, kind: input, shape index: {}]   ;;  %s704_s6 = inlined_call_operand.vmem [shape: f32[1,64], index: 6, kind: input, shape index: {}]   ;;  %s705_s7 = inlined_call_operand.vmem [shape: f32[64,32], index: 7, kind: input, shape index: {}]   ;;  %s706_s8 = inlined_call_operand.vmem [shape: f32[1,32], index: 8, kind: input, shape index: {}]   ;;  %s707_s9 = inlined_call_operand.hbm [shape: f32[8,32], index: 9, kind: output, shape index: {}]  }
   0x1   :  { %15 = vsyncpa [#allocation4], 0  ;;  %s525_s30 = smov [#allocation2]   ;;  %s477_s13 = scalar_lea.hbm %s698_s0, 128 }
   0x2   :  { %s22_s10 = sshll.u32 %s525_s30, 4  ;;  %p478_p0 = scmp.ne.s32.totalorder %s698_s0, %s477_s13  ;;  %s23_s10 = int_to_ptr.vmem [resolvable:$true] %s22_s10 }
   0x3   :  { %p481_p1 = scmp.lt.u32.totalorder %s477_s13, %s698_s0 }
   0x5   :  { %p483_p2 = pnand %p481_p1, %p478_p0 }
   0x7   :  { %486 = shalt.err (!%p483_p2)
}
   0x8   :  { %s487_s18 = scalar_lea.vmem %s23_s10, 128  ;;  %p492_p4 = scmp.lt.s32.totalorder %s23_s10, %s23_s10 }
   0x9   :  { %p488_p3 = scmp.ne.s32.totalorder %s23_s10, %s487_s18  ;;  %p493_p5 = scmp.lt.s32.totalorder %s487_s18, %s487_s18 }
   0xb   :  { %p494_p6 = por %p493_p5, %p492_p4 }
   0xd   :  { %p495_p7 = pnand %p494_p6, %p488_p3 }
   0xf   :  { %498 = shalt.err (!%p495_p7)
}
  0x10   :  { %25 = dma.hbm_to_vmem [thread:$0]  %s698_s0, 128, %s23_s10, [#allocation3]  }
  0x11   :  { %521 = dma.done.wait [#allocation3], 128  }
  0x12   :  { %522 = vsyncadd [#allocation3], 4294967168  ;;  %v526_v0 = vmov 0.0|0.0   ;;  %vm527_vm0 = vmmov 0   ;;  %v528_v1 = vmov 0.0   ;;  %v529_v2 = vmov 0  }
  0x13   :  { %436 = vmatprep.subr.bf16.mxu0 %v526_v0  ;;  %443 = vmatprep.subr.bf16.mxu1 %v526_v0  ;;  %v46_v3 = vld [vmem:[%s700_s2] sm:$0xff]  ;;  %v47_v4 = vld [vmem:[%s700_s2 + $0x8] sm:$0xff]  ;;  %v48_v5 = vld [vmem:[%s700_s2 + $0x10] sm:$0xff]  ;;  %vm66_vm1 = vcmask 1043456   ;;  %vm530_vm2 = vmmov 1   ;;  %v531_v16 = vmov 1  }
  0x14   :  { %395 = vmatprep.mubr.msk.f32.mxu0 %vm527_vm0, %v528_v1  ;;  %475 = vset.pattern.permute.xlu0 %v529_v2  ;;  %v437_v6 = vpack.c.bf16 %v47_v4, %v46_v3  ;;  %v49_v7 = vld [vmem:[%s700_s2 + $0x18] sm:$0xf]  ;;  %v50_v8 = vld [vmem:[%s699_s1] sm:$0xff]  ;;  %v161_v10 = vld [vmem:[%s703_s5 + $0x8] sm:$0xff]  ;;  %vm62_vm4 = vcmask 228352   ;;  %vm175_vm5 = vcmask 523264  }
  0x15   :  { %414 = vmatprep.mubr.msk.f32.mxu1 %vm527_vm0, %v528_v1  ;;  %54 = vperm.xlu0 %475, %v50_v8   ;;  %v160_v9 = vld [vmem:[%s703_s5] sm:$0xff]  ;;  %v440_v11 = vpack.c.bf16 %v49_v7, %v48_v5  ;;  %v162_v13 = vld [vmem:[%s703_s5 + $0x10] sm:$0xff]  ;;  %v163_v14 = vld [vmem:[%s703_s5 + $0x18] sm:$0xff]  ;;  %s532_s22 = smov [#allocation5]   ;;  %vm338_vm6 = vcmask 261120  }
  0x16   :  { %438 = vmatpush3.bf16.msra.mxu0 %v437_v6  ;;  %v444_v12 = vpack.c.bf16 %v161_v10, %v160_v9  ;;  %vm441_vm3 = vmpackc.low %vm66_vm1, %vm530_vm2  ;;  %v447_v15 = vpack.c.bf16 %v163_v14, %v162_v13  ;;  %v45_v17 = vld [vmem:[#allocation2] sm:$0xff]  ;;  %v165_v19 = vld [vmem:[%s703_s5 + $0x28] sm:$0xff]  ;;  %s346_s0 = sshll.u32 %s532_s22, 4  ;;  %s347_s0 = int_to_ptr.vmem [resolvable:$true] %s346_s0 }
  0x17   :  { %439 = vmatprep.subr.bf16.mxu0 %v526_v0  ;;  %v164_v18 = vld [vmem:[%s703_s5 + $0x20] sm:$0xff]  ;;  %v166_v21 = vld [vmem:[%s703_s5 + $0x30] sm:$0xff]  ;;  %v167_v22 = vld [vmem:[%s703_s5 + $0x38] sm:$0xff]  ;;  %p504_p9 = scmp.lt.s32.totalorder %s347_s0, %s347_s0 }
  0x18   :  { %445 = vmatpush3.bf16.msra.mxu1 %v444_v12  ;;  %v450_v20 = vpack.c.bf16 %v165_v19, %v164_v18  ;;  %v453_v23 = vpack.c.bf16 %v167_v22, %v166_v21  ;;  %v250_v24 = vld [vmem:[%s705_s7] sm:$0xff]  ;;  %v251_v25 = vld [vmem:[%s705_s7 + $0x8] sm:$0xff]  ;;  %v252_v26 = vld [vmem:[%s705_s7 + $0x10] sm:$0xff] }
  0x19   :  { %476 = vset.pattern.permute.xlu0 %v531_v16  ;;  %446 = vmatprep.subr.bf16.mxu1 %v526_v0  ;;  %v456_v27 = vpack.c.bf16 %v251_v25, %v250_v24  ;;  %v253_v28 = vld [vmem:[%s705_s7 + $0x18] sm:$0xff]  ;;  %v254_v30 = vld [vmem:[%s705_s7 + $0x20] sm:$0xff]  ;;  %v255_v31 = vld [vmem:[%s705_s7 + $0x28] sm:$0xff] }
  0x1a   :  { %442 = vmatpush3.bf16.msk.msra.mxu0 %vm441_vm3, %v440_v11  ;;  %142 = vperm.xlu0 %476, %v50_v8   ;;  %v459_v29 = vpack.c.bf16 %v253_v28, %v252_v26  ;;  %v462_v32 = vpack.c.bf16 %v255_v31, %v254_v30  ;;  %v355_v34 = vld [vmem:[%s701_s3] ss:$0 sm:$0xff]  ;;  %v358_v35 = vld [vmem:[%s701_s3 + $0x1] ss:$0 sm:$0xff]  ;;  %v256_v46 = vld [vmem:[%s705_s7 + $0x30] sm:$0xff] }
  0x1b   :  { %455 = vmatprep.subr.bf16.mxu0 %v526_v0  ;;  %v359_v42 = vld [vmem:[%s702_s4] ss:$0 sm:$0xff]  ;;  %v257_v47 = vld [vmem:[%s705_s7 + $0x38] sm:$0xff]  ;;  %s499_s7 = scalar_lea.vmem %s347_s0, 128 }
  0x1c   :  { %448 = vmatpush3.bf16.msra.mxu1 %v447_v15  ;;  %v465_v48 = vpack.c.bf16 %v257_v47, %v256_v46  ;;  %v360_v49 = vld [vmem:[%s704_s6] ss:$0 sm:$0xff]  ;;  %p500_p8 = scmp.ne.s32.totalorder %s347_s0, %s499_s7  ;;  %p505_p10 = scmp.lt.s32.totalorder %s499_s7, %s499_s7 }
  0x1d   :  { %396 = vmatmul.mubr.msk.f32.vlgmr.msra.gmra.mrb[0].mxu0 %vm62_vm4, %v45_v17  ;;  %449 = vmatprep.subr.bf16.mxu1 %v526_v0  ;;  %v362_v54 = vld [vmem:[%s706_s8] ss:$0 sm:$0xff] }
  0x1e   :  { %433 = vmatprep.mubr.msk.f32.mxu0 %vm527_vm0, %v528_v1  ;;  %457 = vmatpush3.bf16.msra.mxu0 %v456_v27  ;;  %p506_p11 = por %p505_p10, %p504_p9 }
  0x1f   :  { %458 = vmatprep.subr.bf16.mxu0 %v526_v0 }
  0x20   :  { %451 = vmatpush3.bf16.msra.mxu1 %v450_v20  ;;  %p507_p12 = pnand %p506_p11, %p500_p8 }
  0x21   :  { %452 = vmatprep.subr.bf16.mxu1 %v526_v0 }
  0x22   :  { %460 = vmatpush3.bf16.msra.mxu0 %v459_v29 }
  0x23   :  { %461 = vmatprep.subr.bf16.mxu0 %v526_v0 }
  0x24   :  { %454 = vmatpush3.bf16.msra.mxu1 %v453_v23 }
  0x26   :  { %463 = vmatpush3.bf16.msra.mxu0 %v462_v32 }
  0x27   :  { %464 = vmatprep.subr.bf16.mxu0 %v526_v0 }
  0x2a   :  { %466 = vmatpush3.bf16.msra.mxu0 %v465_v48 }
  0x94   :  { %v55_v33 = vpop.permute.xlu0 %54 }
  0x95   :  { %v61_v37 = vmul.f32 %v355_v34, %v55_v33 }
  0x99   :  { %v143_v36 = vpop.permute.xlu0 %142 }
  0x9a   :  { %v149_v38 = vmul.f32 %v358_v35, %v143_v36 }
  0xf0   :  { %v136_v39 = vpop.f32.mrb[0].mxu0 }
  0xf1   :  { %v137_v40 = vadd.f32 %v136_v39, %v61_v37  ;;  %v397_v41 = vpop.f32.mrb[1].mxu0 }
  0xf3   :  { %v150_v43 = vadd.f32 %v149_v38, %v137_v40 }
  0xf5   :  { %v158_v44 = vadd.f32 %v359_v42, %v150_v43 }
  0xf7   :  { %v159_v45 = vmax.f32 %v158_v44, 0.0 }
  0xf9   :  { %415 = vmatmul.mubr.msk.f32.vlgmr.msra.gmra.mrb[0].mxu1 %vm175_vm5, %v159_v45 }
 0x1cc   :  { %v245_v50 = vpop.f32.mrb[0].mxu1 }
 0x1cd   :  { %v246_v51 = vadd.f32 %v360_v49, %v245_v50  ;;  %v416_v52 = vpop.f32.mrb[1].mxu1 }
 0x1cf   :  { %v249_v53 = vmax.f32 %v246_v51, 0.0 }
 0x1d1   :  { %434 = vmatmul.mubr.msk.f32.vlgmr.msra.gmra.mrb[2].mxu0 %vm175_vm5, %v249_v53 }
 0x2a4   :  { %v334_v55 = vpop.f32.mrb[2].mxu0 }
 0x2a5   :  { %v335_v56 = vadd.f32 %v362_v54, %v334_v55  ;;  %v435_v57 = vpop.f32.mrb[3].mxu0 }
 0x2a7   :  { %339 = vst.msk [vmem:[#allocation5] sm:$0xff] %vm338_vm6, %v335_v56 }
 0x2a8   :  { %510 = shalt.err (!%p507_p12)
}
 0x2a9   :  { %s511_s24 = scalar_lea.hbm %s707_s9, 128 }
 0x2aa   :  { %p512_p13 = scmp.ne.s32.totalorder %s707_s9, %s511_s24  ;;  %p515_p0 = scmp.lt.u32.totalorder %s511_s24, %s707_s9 }
 0x2ac   :  { %p517_p1 = pnand %p515_p0, %p512_p13 }
 0x2ae   :  { %520 = shalt.err (!%p517_p1)
}
 0x2af   :  { %349 = dma.vmem_to_hbm [thread:$0]  %s347_s0, 128, %s707_s9, [#allocation4]  }
 0x2b0   :  { %523 = dma.done.wait [#allocation4], 128  }
 0x2b1   :  { %524 = vsyncadd [#allocation4], 4294967168 }
 0x2b2   :  { %353 = vsyncpa [#allocation3], 1 }
 0x2b3   :  { %354 = vsyncpa [#allocation4], 1 }

</bundles_post_ra>
